<compile_context>
chip_gen: v6e
topology: v6e:2x2x1
jax: 0.10.0
libtpu: 0.0.40
codegen_flags: <defaults>
</compile_context>

<pallas_src>
import jax
import jax.numpy as jnp
from jax.experimental import pallas as pl
from jax.experimental.pallas import tpu as pltpu

LANE = 128  # pad all feature dims (and the node dim) to multiples of this


def _round_up(v, m):
    return ((v + m - 1) // m) * m


# ---------------------------------------------------------------------------
# Fused Pallas kernel: all three GCN layers (+ReLUs) in one body.
# ---------------------------------------------------------------------------
def fused_gcn3_kernel(a_ref, x_ref, w1_ref, b1_ref, w3_ref, b3_ref,
                      w2_ref, b2_ref, o_ref):
    a = a_ref[...]                                              # [NP, NP] bf16

    # ---- layer 1 (F_in=8 < F_out=32): (A @ X) @ W1 ------------------------
    ax = jnp.dot(a, x_ref[...], preferred_element_type=jnp.float32)
    h = jnp.dot(ax.astype(jnp.bfloat16), w1_ref[...],
                preferred_element_type=jnp.float32)
    h = jnp.maximum(h + b1_ref[...], 0.0)                       # f32 VPU

    # ---- layer 3 (32 -> 16): A @ (H @ W3) ---------------------------------
    hw = jnp.dot(h.astype(jnp.bfloat16), w3_ref[...],
                 preferred_element_type=jnp.float32)
    h = jnp.dot(a, hw.astype(jnp.bfloat16),
                preferred_element_type=jnp.float32)
    h = jnp.maximum(h + b3_ref[...], 0.0)

    # F.dropout(x, training=self.training): eval mode -> identity.

    # ---- layer 2 (16 -> C): A @ (H @ W2) ----------------------------------
    hw = jnp.dot(h.astype(jnp.bfloat16), w2_ref[...],
                 preferred_element_type=jnp.float32)
    h = jnp.dot(a, hw.astype(jnp.bfloat16),
                preferred_element_type=jnp.float32)
    o_ref[...] = jnp.maximum(h + b2_ref[...], 0.0)              # lane-dense store


def _pad2(x, rows, cols):
    r, c = x.shape
    return jnp.pad(x, ((0, rows - r), (0, cols - c)))


def net_forward(x, a_hat, params):
    """Fused 3-layer GCN forward. Returns [N, num_classes] float32."""
    n = x.shape[0]
    num_classes = params["b2"].shape[0]
    np_ = _round_up(n, LANE)  # padded node dim (lane-dense A_hat, aligned rows)

    # bf16 matmul operands (feature AND node dims zero-padded); biases stay f32.
    a_bf = _pad2(a_hat, np_, np_).astype(jnp.bfloat16)
    x_p = _pad2(x, np_, LANE).astype(jnp.bfloat16)
    w1 = _pad2(params["w1"], LANE, LANE).astype(jnp.bfloat16)
    w3 = _pad2(params["w3"], LANE, LANE).astype(jnp.bfloat16)
    w2 = _pad2(params["w2"], LANE, LANE).astype(jnp.bfloat16)
    b1 = _pad2(params["b1"].reshape(1, -1), 1, LANE)
    b3 = _pad2(params["b3"].reshape(1, -1), 1, LANE)
    b2 = _pad2(params["b2"].reshape(1, -1), 1, LANE)

    vmem = pl.BlockSpec(memory_space=pltpu.MemorySpace.VMEM)
    out = pl.pallas_call(
        fused_gcn3_kernel,
        out_shape=jax.ShapeDtypeStruct((np_, LANE), jnp.float32),
        in_specs=[vmem] * 8,
        out_specs=vmem,
    )(a_bf, x_p, w1, b1, w3, b3, w2, b2)

    return out[:n, :num_classes]


# ---------------------------------------------------------------------------
# Glue: build normalized adjacency from edge_index (plain JAX, not hot path)
# ---------------------------------------------------------------------------
def normalized_adjacency(edge_index, num_nodes):
    src, dst = edge_index[0], edge_index[1]
    a = jnp.zeros((num_nodes, num_nodes), jnp.float32)
    a = a.at[src, dst].set(1.0)
    a = a + jnp.eye(num_nodes, dtype=jnp.float32)       # add self loops
    deg = jnp.sum(a, axis=1)
    d_inv_sqrt = jnp.where(deg > 0, 1.0 / jnp.sqrt(deg), 0.0)
    return d_inv_sqrt[:, None] * a * d_inv_sqrt[None, :]


def init_params(key, num_features, num_classes):
    k1, k3, k2 = jax.random.split(key, 3)

    def glorot(k, fan_in, fan_out):
        lim = jnp.sqrt(6.0 / (fan_in + fan_out))
        return jax.random.uniform(
            k, (fan_in, fan_out), jnp.float32, minval=-lim, maxval=lim
        )

    return {
        "w1": glorot(k1, num_features, 32),
        "b1": jnp.zeros((32,), jnp.float32),
        "w3": glorot(k3, 32, 16),
        "b3": jnp.zeros((16,), jnp.float32),
        "w2": glorot(k2, 16, num_classes),
        "b2": jnp.zeros((num_classes,), jnp.float32),
    }


if __name__ == "__main__":
    key = jax.random.PRNGKey(0)
    k_x, k_p = jax.random.split(key)

    num_nodes = 16
    num_features = 8
    num_classes = 4

    # Node features
    x = jax.random.normal(k_x, (num_nodes, num_features), jnp.float32)

    # Deterministic ring graph (undirected): edge_index shape [2, 2*N]
    idx = jnp.arange(num_nodes, dtype=jnp.int32)
    nxt = (idx + 1) % num_nodes
    edge_index = jnp.stack(
        [jnp.concatenate([idx, nxt]), jnp.concatenate([nxt, idx])], axis=0
    )

    a_hat = normalized_adjacency(edge_index, num_nodes)
    params = init_params(k_p, num_features, num_classes)

    out = jax.jit(net_forward)(x, a_hat, params)
    out = jax.block_until_ready(out)
    assert out.shape == (num_nodes, num_classes)

    # --- Reference 1: mirrors the kernel's bf16 operand casts (tight) -------
    def bf(v):
        return v.astype(jnp.bfloat16).astype(jnp.float32)

    a_r, x_r = bf(a_hat), bf(x)
    w1_r, w3_r, w2_r = bf(params["w1"]), bf(params["w3"]), bf(params["w2"])

    h = jnp.maximum(bf(a_r @ x_r) @ w1_r + params["b1"][None, :], 0.0)
    h = jnp.maximum(a_r @ bf(h @ w3_r) + params["b3"][None, :], 0.0)
    ref_bf16 = jnp.maximum(a_r @ bf(h @ w2_r) + params["b2"][None, :], 0.0)
    assert jnp.allclose(out, ref_bf16, atol=1e-2, rtol=1e-2)

    # --- Reference 2: pure f32 math (loose; bf16 rounding only) -------------
    def ref_layer(a, h, w, b):
        return jnp.maximum(a @ (h @ w) + b[None, :], 0.0)

    ref = ref_layer(a_hat, x, params["w1"], params["b1"])
    ref = ref_layer(a_hat, ref, params["w3"], params["b3"])
    ref = ref_layer(a_hat, ref, params["w2"], params["b2"])
    assert jnp.allclose(out, ref, atol=0.1, rtol=0.1)

    print("KERNEL_OK")
</pallas_src>

<mosaic_0001>
module attributes {stable_mosaic.version = 11 : i64} {
  func.func @fused_gcn3_kernel(%arg0: memref<128x128xbf16, #tpu.memory_space<vmem>>, %arg1: memref<128x128xbf16, #tpu.memory_space<vmem>>, %arg2: memref<128x128xbf16, #tpu.memory_space<vmem>>, %arg3: memref<1x128xf32, #tpu.memory_space<vmem>>, %arg4: memref<128x128xbf16, #tpu.memory_space<vmem>>, %arg5: memref<1x128xf32, #tpu.memory_space<vmem>>, %arg6: memref<128x128xbf16, #tpu.memory_space<vmem>>, %arg7: memref<1x128xf32, #tpu.memory_space<vmem>>, %arg8: memref<128x128xf32, #tpu.memory_space<vmem>>) attributes {dimension_semantics = [], scalar_prefetch = 0 : i64, scratch_operands = 0 : i64, tpu.core_type = #tpu.core_type<tc>} {
    %c0 = arith.constant 0 : index
    %c0_0 = arith.constant 0 : index
    %0 = vector.load %arg0[%c0, %c0_0] : memref<128x128xbf16, #tpu.memory_space<vmem>>, vector<128x128xbf16>
    %c0_1 = arith.constant 0 : index
    %c0_2 = arith.constant 0 : index
    %1 = vector.load %arg1[%c0_1, %c0_2] : memref<128x128xbf16, #tpu.memory_space<vmem>>, vector<128x128xbf16>
    %cst = arith.constant dense<0.000000e+00> : vector<128x128xf32>
    %2 = tpu.matmul %0, %1, %cst {dimension_numbers = #tpu.dot_dimension_numbers<[1], [0], [0], [1], [0, 0, 1, 1], [], []>} : vector<128x128xbf16>, vector<128x128xbf16>, vector<128x128xf32> -> vector<128x128xf32>
    %3 = arith.truncf %2 : vector<128x128xf32> to vector<128x128xbf16>
    %c0_3 = arith.constant 0 : index
    %c0_4 = arith.constant 0 : index
    %4 = vector.load %arg2[%c0_3, %c0_4] : memref<128x128xbf16, #tpu.memory_space<vmem>>, vector<128x128xbf16>
    %cst_5 = arith.constant dense<0.000000e+00> : vector<128x128xf32>
    %5 = tpu.matmul %3, %4, %cst_5 {dimension_numbers = #tpu.dot_dimension_numbers<[1], [0], [0], [1], [0, 0, 1, 1], [], []>} : vector<128x128xbf16>, vector<128x128xbf16>, vector<128x128xf32> -> vector<128x128xf32>
    %c0_6 = arith.constant 0 : index
    %c0_7 = arith.constant 0 : index
    %6 = vector.load %arg3[%c0_6, %c0_7] : memref<1x128xf32, #tpu.memory_space<vmem>>, vector<1x128xf32>
    %7 = vector.broadcast %6 : vector<1x128xf32> to vector<128x128xf32>
    %8 = arith.addf %5, %7 : vector<128x128xf32>
    %cst_8 = arith.constant 0.000000e+00 : f32
    %9 = vector.broadcast %cst_8 : f32 to vector<128x128xf32>
    %10 = arith.maximumf %8, %9 : vector<128x128xf32>
    %11 = arith.truncf %10 : vector<128x128xf32> to vector<128x128xbf16>
    %c0_9 = arith.constant 0 : index
    %c0_10 = arith.constant 0 : index
    %12 = vector.load %arg4[%c0_9, %c0_10] : memref<128x128xbf16, #tpu.memory_space<vmem>>, vector<128x128xbf16>
    %cst_11 = arith.constant dense<0.000000e+00> : vector<128x128xf32>
    %13 = tpu.matmul %11, %12, %cst_11 {dimension_numbers = #tpu.dot_dimension_numbers<[1], [0], [0], [1], [0, 0, 1, 1], [], []>} : vector<128x128xbf16>, vector<128x128xbf16>, vector<128x128xf32> -> vector<128x128xf32>
    %14 = arith.truncf %13 : vector<128x128xf32> to vector<128x128xbf16>
    %cst_12 = arith.constant dense<0.000000e+00> : vector<128x128xf32>
    %15 = tpu.matmul %0, %14, %cst_12 {dimension_numbers = #tpu.dot_dimension_numbers<[1], [0], [0], [1], [0, 0, 1, 1], [], []>} : vector<128x128xbf16>, vector<128x128xbf16>, vector<128x128xf32> -> vector<128x128xf32>
    %c0_13 = arith.constant 0 : index
    %c0_14 = arith.constant 0 : index
    %16 = vector.load %arg5[%c0_13, %c0_14] : memref<1x128xf32, #tpu.memory_space<vmem>>, vector<1x128xf32>
    %17 = vector.broadcast %16 : vector<1x128xf32> to vector<128x128xf32>
    %18 = arith.addf %15, %17 : vector<128x128xf32>
    %cst_15 = arith.constant 0.000000e+00 : f32
    %19 = vector.broadcast %cst_15 : f32 to vector<128x128xf32>
    %20 = arith.maximumf %18, %19 : vector<128x128xf32>
    %21 = arith.truncf %20 : vector<128x128xf32> to vector<128x128xbf16>
    %c0_16 = arith.constant 0 : index
    %c0_17 = arith.constant 0 : index
    %22 = vector.load %arg6[%c0_16, %c0_17] : memref<128x128xbf16, #tpu.memory_space<vmem>>, vector<128x128xbf16>
    %cst_18 = arith.constant dense<0.000000e+00> : vector<128x128xf32>
    %23 = tpu.matmul %21, %22, %cst_18 {dimension_numbers = #tpu.dot_dimension_numbers<[1], [0], [0], [1], [0, 0, 1, 1], [], []>} : vector<128x128xbf16>, vector<128x128xbf16>, vector<128x128xf32> -> vector<128x128xf32>
    %24 = arith.truncf %23 : vector<128x128xf32> to vector<128x128xbf16>
    %cst_19 = arith.constant dense<0.000000e+00> : vector<128x128xf32>
    %25 = tpu.matmul %0, %24, %cst_19 {dimension_numbers = #tpu.dot_dimension_numbers<[1], [0], [0], [1], [0, 0, 1, 1], [], []>} : vector<128x128xbf16>, vector<128x128xbf16>, vector<128x128xf32> -> vector<128x128xf32>
    %c0_20 = arith.constant 0 : index
    %c0_21 = arith.constant 0 : index
    %26 = vector.load %arg7[%c0_20, %c0_21] : memref<1x128xf32, #tpu.memory_space<vmem>>, vector<1x128xf32>
    %27 = vector.broadcast %26 : vector<1x128xf32> to vector<128x128xf32>
    %28 = arith.addf %25, %27 : vector<128x128xf32>
    %cst_22 = arith.constant 0.000000e+00 : f32
    %29 = vector.broadcast %cst_22 : f32 to vector<128x128xf32>
    %30 = arith.maximumf %28, %29 : vector<128x128xf32>
    %c0_23 = arith.constant 0 : index
    %c0_24 = arith.constant 0 : index
    %31 = vector.load %arg8[%c0_23, %c0_24] : memref<128x128xf32, #tpu.memory_space<vmem>>, vector<128x128xf32>
    tpu.vector_store %arg8[%c0_23, %c0_24], %30 {strides = array<i32>} : memref<128x128xf32, #tpu.memory_space<vmem>>, vector<128x128xf32>,
    return
  }
}

</mosaic_0001>

<bundles_post_ra>
// kernel: net_forward.1
= control target key start
LH: loop header
LB: loop body
LE: loop exit
PB: predicated region body
PF: predicated region fallthrough
CT: control target
= control target key end

     0   :  { %s1694_s1 = inlined_call_operand.vmem [shape: bf16[128,128], index: 1, kind: input, shape index: {}]   ;;  %s1695_s0 = inlined_call_operand.vmem [shape: bf16[128,128], index: 0, kind: input, shape index: {}]   ;;  %s1696_s2 = inlined_call_operand.vmem [shape: bf16[128,128], index: 2, kind: input, shape index: {}]   ;;  %s1697_s4 = inlined_call_operand.vmem [shape: bf16[128,128], index: 4, kind: input, shape index: {}]   ;;  %s1698_s3 = inlined_call_operand.vmem [shape: f32[1,128], index: 3, kind: input, shape index: {}]   ;;  %s1699_s6 = inlined_call_operand.vmem [shape: bf16[128,128], index: 6, kind: input, shape index: {}]   ;;  %s1700_s5 = inlined_call_operand.vmem [shape: f32[1,128], index: 5, kind: input, shape index: {}]   ;;  %s1701_s7 = inlined_call_operand.vmem [shape: f32[1,128], index: 7, kind: input, shape index: {}]   ;;  %s1702_s8 = inlined_call_operand.vmem [shape: f32[128,128], index: 8, kind: output, shape index: {}]  }
   0x1   :  { %v1392_v0 = vld [vmem:[%s1694_s1 + $0x38] sm:$0xff]   ;;  %v1393_v1 = vld [vmem:[%s1694_s1 + $0x30] sm:$0xff]   ;;  %v1394_v2 = vld [vmem:[%s1694_s1 + $0x28] sm:$0xff]  }
   0x2   :  { %1200 = vmatprep.subr.bf16.mxu0 %v1392_v0  ;;  %v1395_v3 = vld [vmem:[%s1694_s1 + $0x20] sm:$0xff]   ;;  %v1396_v5 = vld [vmem:[%s1694_s1 + $0x18] sm:$0xff]   ;;  %v1397_v6 = vld [vmem:[%s1694_s1 + $0x10] sm:$0xff]  }
   0x3   :  { %1201 = vmatpush3.bf16.msra.mxu0 %v1392_v0  ;;  %v1492_v4 = vld [vmem:[%s1695_s0] sm:$0xff]   ;;  %v1408_v7 = vld [vmem:[%s1696_s2 + $0x38] sm:$0xff]   ;;  %v1409_v8 = vld [vmem:[%s1696_s2 + $0x30] sm:$0xff]  }
   0x4   :  { %1202 = vmatprep.subr.bf16.mxu0 %v1393_v1  ;;  %1216 = vmatprep.mubr.bf16.mxu0 %v1492_v4  ;;  %v1398_v9 = vld [vmem:[%s1694_s1 + $0x8] sm:$0xff]   ;;  %v1399_v11 = vld [vmem:[%s1694_s1] sm:$0xff]   ;;  %v1412_v13 = vld [vmem:[%s1696_s2 + $0x18] sm:$0xff]  }
   0x5   :  { %1232 = vmatprep.subr.bf16.mxu1 %v1408_v7  ;;  %v1410_v10 = vld [vmem:[%s1696_s2 + $0x28] sm:$0xff]   ;;  %v1411_v12 = vld [vmem:[%s1696_s2 + $0x20] sm:$0xff]   ;;  %v1530_v15 = vld [vmem:[%s1695_s0 + $0x10] sm:$0xff]  }
   0x6   :  { %1233 = vmatpush3.bf16.msra.mxu1 %v1408_v7  ;;  %v1525_v14 = vld [vmem:[%s1695_s0 + $0x8] sm:$0xff]   ;;  %v1413_v16 = vld [vmem:[%s1696_s2 + $0x10] sm:$0xff]   ;;  %v1540_v17 = vld [vmem:[%s1695_s0 + $0x18] sm:$0xff]  }
   0x7   :  { %1203 = vmatpush3.bf16.msra.mxu0 %v1393_v1  ;;  %1234 = vmatprep.subr.bf16.mxu1 %v1409_v8  ;;  %v1545_v18 = vld [vmem:[%s1695_s0 + $0x20] sm:$0xff]   ;;  %v1552_v19 = vld [vmem:[%s1695_s0 + $0x28] sm:$0xff]   ;;  %v1557_v20 = vld [vmem:[%s1695_s0 + $0x30] sm:$0xff]  }
   0x8   :  { %1204 = vmatprep.subr.bf16.mxu0 %v1394_v2  ;;  %v1564_v21 = vld [vmem:[%s1695_s0 + $0x38] sm:$0xff]   ;;  %v1414_v22 = vld [vmem:[%s1696_s2 + $0x8] sm:$0xff]   ;;  %v1415_v23 = vld [vmem:[%s1696_s2] sm:$0xff]  }
   0x9   :  { %v1416_v24 = vld [vmem:[%s1697_s4 + $0x38] sm:$0xff]   ;;  %v1417_v25 = vld [vmem:[%s1697_s4 + $0x30] sm:$0xff]   ;;  %v1418_v26 = vld [vmem:[%s1697_s4 + $0x28] sm:$0xff]  }
   0xa   :  { %1235 = vmatpush3.bf16.msra.mxu1 %v1409_v8  ;;  %v1419_v27 = vld [vmem:[%s1697_s4 + $0x20] sm:$0xff]   ;;  %v1420_v28 = vld [vmem:[%s1697_s4 + $0x18] sm:$0xff]   ;;  %v1421_v53 = vld [vmem:[%s1697_s4 + $0x10] sm:$0xff]  }
   0xb   :  { %1205 = vmatpush3.bf16.msra.mxu0 %v1394_v2  ;;  %1236 = vmatprep.subr.bf16.mxu1 %v1410_v10  ;;  %v1422_v54 = vld [vmem:[%s1697_s4 + $0x8] sm:$0xff]   ;;  %v1423_v55 = vld [vmem:[%s1697_s4] sm:$0xff]  }
   0xc   :  { %1206 = vmatprep.subr.bf16.mxu0 %v1395_v3  ;;  %v1077_v58 = vld [vmem:[%s1698_s3] ss:$0 sm:$0xff] }
   0xe   :  { %1237 = vmatpush3.bf16.msra.mxu1 %v1410_v10 }
   0xf   :  { %1207 = vmatpush3.bf16.msra.mxu0 %v1395_v3  ;;  %1238 = vmatprep.subr.bf16.mxu1 %v1411_v12 }
  0x10   :  { %1208 = vmatprep.subr.bf16.mxu0 %v1396_v5 }
  0x12   :  { %1239 = vmatpush3.bf16.msra.mxu1 %v1411_v12 }
  0x13   :  { %1209 = vmatpush3.bf16.msra.mxu0 %v1396_v5  ;;  %1240 = vmatprep.subr.bf16.mxu1 %v1412_v13 }
  0x14   :  { %1210 = vmatprep.subr.bf16.mxu0 %v1397_v6 }
  0x16   :  { %1241 = vmatpush3.bf16.msra.mxu1 %v1412_v13 }
  0x17   :  { %1211 = vmatpush3.bf16.msra.mxu0 %v1397_v6  ;;  %1242 = vmatprep.subr.bf16.mxu1 %v1413_v16 }
  0x18   :  { %1212 = vmatprep.subr.bf16.mxu0 %v1398_v9 }
  0x1a   :  { %1243 = vmatpush3.bf16.msra.mxu1 %v1413_v16 }
  0x1b   :  { %1213 = vmatpush3.bf16.msra.mxu0 %v1398_v9  ;;  %1244 = vmatprep.subr.bf16.mxu1 %v1414_v22 }
  0x1c   :  { %1214 = vmatprep.subr.bf16.mxu0 %v1399_v11 }
  0x1e   :  { %1245 = vmatpush3.bf16.msra.mxu1 %v1414_v22 }
  0x1f   :  { %1215 = vmatpush3.bf16.msra.mxu0 %v1399_v11  ;;  %1246 = vmatprep.subr.bf16.mxu1 %v1415_v23 }
  0x20   :  { %1264 = vmatprep.subr.bf16.mxu0 %v1416_v24 }
  0x22   :  { %1217 = vmatmul.mubr.bf16.vlgmr.msra.gmra.mxu0 %v1525_v14  ;;  %1247 = vmatpush3.bf16.msra.mxu1 %v1415_v23 }
  0x23   :  { %1220 = vmatprep.mubr.bf16.mxu0 %v1530_v15  ;;  %1265 = vmatpush3.bf16.msra.mxu0 %v1416_v24 }
  0x24   :  { %1266 = vmatprep.subr.bf16.mxu0 %v1417_v25 }
  0x27   :  { %1267 = vmatpush3.bf16.msra.mxu0 %v1417_v25 }
  0x28   :  { %1268 = vmatprep.subr.bf16.mxu0 %v1418_v26 }
  0x2a   :  { %1221 = vmatmul.mubr.bf16.gmra.mxu0 %v1540_v17 }
  0x2b   :  { %1224 = vmatprep.mubr.bf16.mxu0 %v1545_v18  ;;  %1269 = vmatpush3.bf16.msra.mxu0 %v1418_v26 }
  0x2c   :  { %1270 = vmatprep.subr.bf16.mxu0 %v1419_v27 }
  0x2f   :  { %1271 = vmatpush3.bf16.msra.mxu0 %v1419_v27 }
  0x30   :  { %1272 = vmatprep.subr.bf16.mxu0 %v1420_v28 }
  0x32   :  { %1225 = vmatmul.mubr.bf16.gmra.mxu0 %v1552_v19 }
  0x33   :  { %1228 = vmatprep.mubr.bf16.mxu0 %v1557_v20  ;;  %1273 = vmatpush3.bf16.msra.mxu0 %v1420_v28 }
  0x34   :  { %1274 = vmatprep.subr.bf16.mxu0 %v1421_v53 }
  0x37   :  { %1275 = vmatpush3.bf16.msra.mxu0 %v1421_v53 }
  0x38   :  { %1276 = vmatprep.subr.bf16.mxu0 %v1422_v54 }
  0x3a   :  { %1229 = vmatmul.mubr.bf16.gmra.mxu0 %v1564_v21 }
  0x3b   :  { %1277 = vmatpush3.bf16.msra.mxu0 %v1422_v54 }
  0x3c   :  { %1278 = vmatprep.subr.bf16.mxu0 %v1423_v55 }
  0x3f   :  { %1279 = vmatpush3.bf16.msra.mxu0 %v1423_v55 }
  0xe2   :  { %v1218_v29 = vpop.f32.mrf.mxu0 }
  0xe4   :  { %v192_v30 = vpop.f32.mrf.mxu0 }
  0xe6   :  { %v1219_v31 = vpop.f32.mrf.mxu0 }
  0xe7   :  { %v256_v34 = vpack.c.bf16 %v1219_v31, %v1218_v29 }
  0xe8   :  { %v195_v32 = vpop.f32.mrf.mxu0 }
  0xe9   :  { %v255_v33 = vpack.c.bf16 %v195_v32, %v192_v30 }
  0xea   :  { %v1222_v35 = vpop.f32.mrf.mxu0 }
  0xeb   :  { %1248 = vmatprep.mubr.bf16.mxu1 %v255_v33 }
  0xec   :  { %v208_v36 = vpop.f32.mrf.mxu0  ;;  %1249 = vmatmul.mubr.bf16.vlgmr.msra.gmra.mxu1 %v256_v34 }
  0xee   :  { %v1223_v37 = vpop.f32.mrf.mxu0 }
  0xef   :  { %v258_v40 = vpack.c.bf16 %v1223_v37, %v1222_v35 }
  0xf0   :  { %v211_v38 = vpop.f32.mrf.mxu0 }
  0xf1   :  { %v257_v39 = vpack.c.bf16 %v211_v38, %v208_v36 }
  0xf2   :  { %v1226_v41 = vpop.f32.mrf.mxu0 }
  0xf3   :  { %1252 = vmatprep.mubr.bf16.mxu1 %v257_v39 }
  0xf4   :  { %v224_v42 = vpop.f32.mrf.mxu0  ;;  %1253 = vmatmul.mubr.bf16.gmra.mxu1 %v258_v40 }
  0xf6   :  { %v1227_v43 = vpop.f32.mrf.mxu0 }
  0xf7   :  { %v260_v46 = vpack.c.bf16 %v1227_v43, %v1226_v41 }
  0xf8   :  { %v227_v44 = vpop.f32.mrf.mxu0 }
  0xf9   :  { %v259_v45 = vpack.c.bf16 %v227_v44, %v224_v42 }
  0xfa   :  { %v1230_v47 = vpop.f32.mrf.mxu0 }
  0xfb   :  { %1256 = vmatprep.mubr.bf16.mxu1 %v259_v45 }
  0xfc   :  { %v240_v48 = vpop.f32.mrf.mxu0  ;;  %1257 = vmatmul.mubr.bf16.gmra.mxu1 %v260_v46 }
  0xfe   :  { %v1231_v49 = vpop.f32.mrf.mxu0 }
  0xff   :  { %v262_v52 = vpack.c.bf16 %v1231_v49, %v1230_v47 }
 0x100   :  { %v243_v50 = vpop.f32.mrf.mxu0 }
 0x101   :  { %v261_v51 = vpack.c.bf16 %v243_v50, %v240_v48 }
 0x103   :  { %1260 = vmatprep.mubr.bf16.mxu1 %v261_v51 }
 0x104   :  { %1261 = vmatmul.mubr.bf16.gmra.mxu1 %v262_v52 }
 0x105   :  { %1312 = vmatprep.mubr.bf16.mxu1 %v1492_v4 }
 0x1ac   :  { %v1250_v56 = vpop.f32.mrf.mxu1 }
 0x1ad   :  { %v377_v62 = vadd.f32 %v1250_v56, %v1077_v58 }
 0x1ae   :  { %v368_v57 = vpop.f32.mrf.mxu1 }
 0x1af   :  { %v369_v60 = vadd.f32 %v1077_v58, %v368_v57  ;;  %v433_v6 = vmax.f32 %v377_v62, 0.0  ;;  %v1424_v57 = vld [vmem:[%s1699_s6 + $0x38] sm:$0xff]  }
 0x1b0   :  { %v1251_v59 = vpop.f32.mrf.mxu1  ;;  %1328 = vmatprep.subr.bf16.mxu0 %v1424_v57 }
 0x1b1   :  { %v380_v61 = vadd.f32 %v1251_v59, %v1077_v58  ;;  %v431_v3 = vmax.f32 %v369_v60, 0.0  ;;  %v1425_v59 = vld [vmem:[%s1699_s6 + $0x30] sm:$0xff]   ;;  %v1427_v60 = vld [vmem:[%s1699_s6 + $0x20] sm:$0xff]  }
 0x1b2   :  { %v371_v63 = vpop.f32.mrf.mxu1 }
 0x1b3   :  { %v372_v0 = vadd.f32 %v1077_v58, %v371_v63  ;;  %v434_v1 = vmax.f32 %v380_v61, 0.0  ;;  %v1428_v61 = vld [vmem:[%s1699_s6 + $0x18] sm:$0xff]  }
 0x1b4   :  { %v1254_v2 = vpop.f32.mrf.mxu1 }
 0x1b5   :  { %v432_v5 = vmax.f32 %v372_v0, 0.0  ;;  %v448_v9 = vpack.c.bf16 %v434_v1, %v433_v6  ;;  %v393_v13 = vadd.f32 %v1254_v2, %v1077_v58 }
 0x1b6   :  { %v384_v7 = vpop.f32.mrf.mxu1 }
 0x1b7   :  { %v447_v8 = vpack.c.bf16 %v432_v5, %v431_v3  ;;  %v385_v11 = vadd.f32 %v1077_v58, %v384_v7  ;;  %v437_v27 = vmax.f32 %v393_v13, 0.0 }
 0x1b8   :  { %v1255_v10 = vpop.f32.mrf.mxu1 }
 0x1b9   :  { %v396_v12 = vadd.f32 %v1255_v10, %v1077_v58  ;;  %1280 = vmatprep.mubr.bf16.mxu0 %v447_v8  ;;  %v435_v25 = vmax.f32 %v385_v11, 0.0 }
 0x1ba   :  { %v387_v16 = vpop.f32.mrf.mxu1  ;;  %1281 = vmatmul.mubr.bf16.vlgmr.msra.gmra.mxu0 %v448_v9 }
 0x1bb   :  { %v388_v22 = vadd.f32 %v1077_v58, %v387_v16  ;;  %v438_v23 = vmax.f32 %v396_v12, 0.0  ;;  %1329 = vmatpush3.bf16.msra.mxu0 %v1424_v57 }
 0x1bc   :  { %v1258_v24 = vpop.f32.mrf.mxu1  ;;  %1330 = vmatprep.subr.bf16.mxu0 %v1425_v59 }
 0x1bd   :  { %v436_v26 = vmax.f32 %v388_v22, 0.0  ;;  %v450_v30 = vpack.c.bf16 %v438_v23, %v437_v27  ;;  %v409_v34 = vadd.f32 %v1258_v24, %v1077_v58 }
 0x1be   :  { %v400_v28 = vpop.f32.mrf.mxu1 }
 0x1bf   :  { %v449_v29 = vpack.c.bf16 %v436_v26, %v435_v25  ;;  %v401_v32 = vadd.f32 %v1077_v58, %v400_v28  ;;  %v441_v41 = vmax.f32 %v409_v34, 0.0  ;;  %1331 = vmatpush3.bf16.msra.mxu0 %v1425_v59  ;;  %v1094_v34 = vld [vmem:[%s1700_s5] ss:$0 sm:$0xff] }
 0x1c0   :  { %v1259_v31 = vpop.f32.mrf.mxu1 }
 0x1c1   :  { %v412_v33 = vadd.f32 %v1259_v31, %v1077_v58  ;;  %1284 = vmatprep.mubr.bf16.mxu0 %v449_v29  ;;  %v439_v39 = vmax.f32 %v401_v32, 0.0  ;;  %v1430_v31 = vld [vmem:[%s1699_s6 + $0x8] sm:$0xff]   ;;  %v1431_v32 = vld [vmem:[%s1699_s6] sm:$0xff]  }
 0x1c2   :  { %v403_v35 = vpop.f32.mrf.mxu1  ;;  %1285 = vmatmul.mubr.bf16.gmra.mxu0 %v450_v30  ;;  %v1429_v30 = vld [vmem:[%s1699_s6 + $0x10] sm:$0xff]  }
 0x1c3   :  { %v404_v36 = vadd.f32 %v1077_v58, %v403_v35  ;;  %v442_v37 = vmax.f32 %v412_v33, 0.0 }
 0x1c4   :  { %v1262_v38 = vpop.f32.mrf.mxu1 }
 0x1c5   :  { %v440_v40 = vmax.f32 %v404_v36, 0.0  ;;  %v452_v44 = vpack.c.bf16 %v442_v37, %v441_v41  ;;  %v425_v48 = vadd.f32 %v1262_v38, %v1077_v58 }
 0x1c6   :  { %v416_v42 = vpop.f32.mrf.mxu1 }
 0x1c7   :  { %v451_v43 = vpack.c.bf16 %v440_v40, %v439_v39  ;;  %v417_v46 = vadd.f32 %v1077_v58, %v416_v42  ;;  %v445_v54 = vmax.f32 %v425_v48, 0.0 }
 0x1c8   :  { %v1263_v45 = vpop.f32.mrf.mxu1 }
 0x1c9   :  { %v428_v47 = vadd.f32 %v1263_v45, %v1077_v58  ;;  %1288 = vmatprep.mubr.bf16.mxu0 %v451_v43  ;;  %v443_v52 = vmax.f32 %v417_v46, 0.0 }
 0x1ca   :  { %v419_v49 = vpop.f32.mrf.mxu1  ;;  %1289 = vmatmul.mubr.bf16.gmra.mxu0 %v452_v44 }
 0x1cb   :  { %v420_v50 = vadd.f32 %v1077_v58, %v419_v49  ;;  %v446_v51 = vmax.f32 %v428_v47, 0.0  ;;  %v1426_v58 = vld [vmem:[%s1699_s6 + $0x28] sm:$0xff]  }
 0x1cc   :  { %1332 = vmatprep.subr.bf16.mxu0 %v1426_v58 }
 0x1cd   :  { %v444_v53 = vmax.f32 %v420_v50, 0.0  ;;  %v454_v56 = vpack.c.bf16 %v446_v51, %v445_v54  ;;  %1333 = vmatpush3.bf16.msra.mxu0 %v1426_v58 }
 0x1ce   :  { %1334 = vmatprep.subr.bf16.mxu0 %v1427_v60 }
 0x1cf   :  { %v453_v55 = vpack.c.bf16 %v444_v53, %v443_v52 }
 0x1d1   :  { %1292 = vmatprep.mubr.bf16.mxu0 %v453_v55  ;;  %1335 = vmatpush3.bf16.msra.mxu0 %v1427_v60 }
 0x1d2   :  { %1293 = vmatmul.mubr.bf16.gmra.mxu0 %v454_v56  ;;  %1336 = vmatprep.subr.bf16.mxu0 %v1428_v61 }
 0x1d5   :  { %1337 = vmatpush3.bf16.msra.mxu0 %v1428_v61 }
 0x1d6   :  { %1338 = vmatprep.subr.bf16.mxu0 %v1429_v30 }
 0x1d9   :  { %1339 = vmatpush3.bf16.msra.mxu0 %v1429_v30 }
 0x1da   :  { %1340 = vmatprep.subr.bf16.mxu0 %v1430_v31 }
 0x1dd   :  { %1341 = vmatpush3.bf16.msra.mxu0 %v1430_v31 }
 0x1de   :  { %1342 = vmatprep.subr.bf16.mxu0 %v1431_v32 }
 0x1e1   :  { %1343 = vmatpush3.bf16.msra.mxu0 %v1431_v32 }
 0x27a   :  { %v1282_v62 = vpop.f32.mrf.mxu0 }
 0x27c   :  { %v553_v63 = vpop.f32.mrf.mxu0 }
 0x27e   :  { %v1283_v0 = vpop.f32.mrf.mxu0 }
 0x27f   :  { %v617_v28 = vpack.c.bf16 %v1283_v0, %v1282_v62 }
 0x280   :  { %v556_v1 = vpop.f32.mrf.mxu0 }
 0x281   :  { %v616_v29 = vpack.c.bf16 %v556_v1, %v553_v63 }
 0x282   :  { %v1286_v2 = vpop.f32.mrf.mxu0 }
 0x284   :  { %v569_v3 = vpop.f32.mrf.mxu0 }
 0x286   :  { %v1287_v5 = vpop.f32.mrf.mxu0 }
 0x287   :  { %v619_v26 = vpack.c.bf16 %v1287_v5, %v1286_v2 }
 0x288   :  { %v572_v6 = vpop.f32.mrf.mxu0 }
 0x289   :  { %v618_v27 = vpack.c.bf16 %v572_v6, %v569_v3 }
 0x28a   :  { %v1290_v7 = vpop.f32.mrf.mxu0 }
 0x28c   :  { %v585_v8 = vpop.f32.mrf.mxu0 }
 0x28e   :  { %v1291_v9 = vpop.f32.mrf.mxu0 }
 0x28f   :  { %v621_v24 = vpack.c.bf16 %v1291_v9, %v1290_v7 }
 0x290   :  { %v588_v10 = vpop.f32.mrf.mxu0 }
 0x291   :  { %v620_v25 = vpack.c.bf16 %v588_v10, %v585_v8 }
 0x292   :  { %v1294_v11 = vpop.f32.mrf.mxu0 }
 0x294   :  { %v601_v12 = vpop.f32.mrf.mxu0 }
 0x296   :  { %v1295_v13 = vpop.f32.mrf.mxu0 }
 0x297   :  { %v623_v16 = vpack.c.bf16 %v1295_v13, %v1294_v11 }
 0x298   :  { %v604_v22 = vpop.f32.mrf.mxu0 }
 0x299   :  { %v622_v23 = vpack.c.bf16 %v604_v22, %v601_v12  ;;  %1296 = vmatprep.subr.bf16.mxu1 %v623_v16 }
 0x29a   :  { %1297 = vmatpush3.bf16.msra.mxu1 %v623_v16 }
 0x29b   :  { %1298 = vmatprep.subr.bf16.mxu1 %v622_v23 }
 0x29e   :  { %1299 = vmatpush3.bf16.msra.mxu1 %v622_v23 }
 0x29f   :  { %1300 = vmatprep.subr.bf16.mxu1 %v621_v24 }
 0x2a2   :  { %1301 = vmatpush3.bf16.msra.mxu1 %v621_v24 }
 0x2a3   :  { %1302 = vmatprep.subr.bf16.mxu1 %v620_v25 }
 0x2a6   :  { %1303 = vmatpush3.bf16.msra.mxu1 %v620_v25 }
 0x2a7   :  { %1304 = vmatprep.subr.bf16.mxu1 %v619_v26 }
 0x2aa   :  { %1305 = vmatpush3.bf16.msra.mxu1 %v619_v26 }
 0x2ab   :  { %1306 = vmatprep.subr.bf16.mxu1 %v618_v27 }
 0x2ae   :  { %1307 = vmatpush3.bf16.msra.mxu1 %v618_v27 }
 0x2af   :  { %1308 = vmatprep.subr.bf16.mxu1 %v617_v28 }
 0x2b2   :  { %1309 = vmatpush3.bf16.msra.mxu1 %v617_v28 }
 0x2b3   :  { %1310 = vmatprep.subr.bf16.mxu1 %v616_v29 }
 0x2b6   :  { %1311 = vmatpush3.bf16.msra.mxu1 %v616_v29 }
 0x2b9   :  { %1313 = vmatmul.mubr.bf16.vlgmr.msra.gmra.mxu1 %v1525_v14 }
 0x2ba   :  { %1316 = vmatprep.mubr.bf16.mxu1 %v1530_v15 }
 0x2c1   :  { %1317 = vmatmul.mubr.bf16.gmra.mxu1 %v1540_v17 }
 0x2c2   :  { %1320 = vmatprep.mubr.bf16.mxu1 %v1545_v18 }
 0x2c9   :  { %1321 = vmatmul.mubr.bf16.gmra.mxu1 %v1552_v19 }
 0x2ca   :  { %1324 = vmatprep.mubr.bf16.mxu1 %v1557_v20 }
 0x2d1   :  { %1325 = vmatmul.mubr.bf16.gmra.mxu1 %v1564_v21 }
 0x2d2   :  { %1376 = vmatprep.mubr.bf16.mxu1 %v1492_v4 }
 0x379   :  { %v1314_v33 = vpop.f32.mrf.mxu1 }
 0x37a   :  { %v674_v38 = vadd.f32 %v1314_v33, %v1094_v34 }
 0x37b   :  { %v665_v4 = vpop.f32.mrf.mxu1 }
 0x37c   :  { %v666_v36 = vadd.f32 %v1094_v34, %v665_v4  ;;  %v730_v45 = vmax.f32 %v674_v38, 0.0 }
 0x37d   :  { %v1315_v35 = vpop.f32.mrf.mxu1 }
 0x37e   :  { %v677_v37 = vadd.f32 %v1315_v35, %v1094_v34  ;;  %v728_v43 = vmax.f32 %v666_v36, 0.0 }
 0x37f   :  { %v668_v39 = vpop.f32.mrf.mxu1 }
 0x380   :  { %v669_v40 = vadd.f32 %v1094_v34, %v668_v39  ;;  %v731_v41 = vmax.f32 %v677_v37, 0.0 }
 0x381   :  { %v1318_v42 = vpop.f32.mrf.mxu1 }
 0x382   :  { %v729_v44 = vmax.f32 %v669_v40, 0.0  ;;  %v745_v48 = vpack.c.bf16 %v731_v41, %v730_v45  ;;  %v690_v52 = vadd.f32 %v1318_v42, %v1094_v34 }
 0x383   :  { %v681_v46 = vpop.f32.mrf.mxu1 }
 0x384   :  { %v744_v47 = vpack.c.bf16 %v729_v44, %v728_v43  ;;  %v682_v50 = vadd.f32 %v1094_v34, %v681_v46  ;;  %v734_v58 = vmax.f32 %v690_v52, 0.0 }
 0x385   :  { %v1319_v49 = vpop.f32.mrf.mxu1 }
 0x386   :  { %v693_v51 = vadd.f32 %v1319_v49, %v1094_v34  ;;  %1344 = vmatprep.mubr.bf16.mxu0 %v744_v47  ;;  %v732_v57 = vmax.f32 %v682_v50, 0.0 }
 0x387   :  { %v684_v53 = vpop.f32.mrf.mxu1  ;;  %1345 = vmatmul.mubr.bf16.vlgmr.msra.gmra.mxu0 %v745_v48 }
 0x388   :  { %v685_v54 = vadd.f32 %v1094_v34, %v684_v53  ;;  %v735_v55 = vmax.f32 %v693_v51, 0.0 }
 0x389   :  { %v1322_v56 = vpop.f32.mrf.mxu1 }
 0x38a   :  { %v733_v59 = vmax.f32 %v685_v54, 0.0  ;;  %v747_v62 = vpack.c.bf16 %v735_v55, %v734_v58  ;;  %v706_v2 = vadd.f32 %v1322_v56, %v1094_v34  ;;  %v1103_v56 = vld [vmem:[%s1701_s7] ss:$0 sm:$0xff] }
 0x38b   :  { %v697_v60 = vpop.f32.mrf.mxu1 }
 0x38c   :  { %v746_v61 = vpack.c.bf16 %v733_v59, %v732_v57  ;;  %v698_v0 = vadd.f32 %v1094_v34, %v697_v60  ;;  %v738_v10 = vmax.f32 %v706_v2, 0.0 }
 0x38d   :  { %v1323_v63 = vpop.f32.mrf.mxu1 }
 0x38e   :  { %v709_v1 = vadd.f32 %v1323_v63, %v1094_v34  ;;  %1348 = vmatprep.mubr.bf16.mxu0 %v746_v61  ;;  %v736_v8 = vmax.f32 %v698_v0, 0.0 }
 0x38f   :  { %v700_v3 = vpop.f32.mrf.mxu1  ;;  %1349 = vmatmul.mubr.bf16.gmra.mxu0 %v747_v62 }
 0x390   :  { %v701_v5 = vadd.f32 %v1094_v34, %v700_v3  ;;  %v739_v6 = vmax.f32 %v709_v1, 0.0 }
 0x391   :  { %v1326_v7 = vpop.f32.mrf.mxu1 }
 0x392   :  { %v737_v9 = vmax.f32 %v701_v5, 0.0  ;;  %v749_v13 = vpack.c.bf16 %v739_v6, %v738_v10  ;;  %v722_v24 = vadd.f32 %v1326_v7, %v1094_v34 }
 0x393   :  { %v713_v11 = vpop.f32.mrf.mxu1 }
 0x394   :  { %v748_v12 = vpack.c.bf16 %v737_v9, %v736_v8  ;;  %v714_v22 = vadd.f32 %v1094_v34, %v713_v11  ;;  %v742_v30 = vmax.f32 %v722_v24, 0.0 }
 0x395   :  { %v1327_v16 = vpop.f32.mrf.mxu1 }
 0x396   :  { %v725_v23 = vadd.f32 %v1327_v16, %v1094_v34  ;;  %1352 = vmatprep.mubr.bf16.mxu0 %v748_v12  ;;  %v740_v28 = vmax.f32 %v714_v22, 0.0 }
 0x397   :  { %v716_v25 = vpop.f32.mrf.mxu1  ;;  %1353 = vmatmul.mubr.bf16.gmra.mxu0 %v749_v13 }
 0x398   :  { %v717_v26 = vadd.f32 %v1094_v34, %v716_v25  ;;  %v743_v27 = vmax.f32 %v725_v23, 0.0 }
 0x39a   :  { %v741_v29 = vmax.f32 %v717_v26, 0.0  ;;  %v751_v32 = vpack.c.bf16 %v743_v27, %v742_v30 }
 0x39c   :  { %v750_v31 = vpack.c.bf16 %v741_v29, %v740_v28 }
 0x39e   :  { %1356 = vmatprep.mubr.bf16.mxu0 %v750_v31 }
 0x39f   :  { %1357 = vmatmul.mubr.bf16.gmra.mxu0 %v751_v32 }
 0x447   :  { %v1346_v33 = vpop.f32.mrf.mxu0 }
 0x449   :  { %v850_v4 = vpop.f32.mrf.mxu0 }
 0x44b   :  { %v1347_v35 = vpop.f32.mrf.mxu0 }
 0x44c   :  { %v914_v54 = vpack.c.bf16 %v1347_v35, %v1346_v33 }
 0x44d   :  { %v853_v36 = vpop.f32.mrf.mxu0 }
 0x44e   :  { %v913_v55 = vpack.c.bf16 %v853_v36, %v850_v4 }
 0x44f   :  { %v1350_v37 = vpop.f32.mrf.mxu0 }
 0x451   :  { %v866_v38 = vpop.f32.mrf.mxu0 }
 0x453   :  { %v1351_v39 = vpop.f32.mrf.mxu0 }
 0x454   :  { %v916_v52 = vpack.c.bf16 %v1351_v39, %v1350_v37 }
 0x455   :  { %v869_v40 = vpop.f32.mrf.mxu0 }
 0x456   :  { %v915_v53 = vpack.c.bf16 %v869_v40, %v866_v38 }
 0x457   :  { %v1354_v41 = vpop.f32.mrf.mxu0 }
 0x459   :  { %v882_v42 = vpop.f32.mrf.mxu0 }
 0x45b   :  { %v1355_v43 = vpop.f32.mrf.mxu0 }
 0x45c   :  { %v918_v50 = vpack.c.bf16 %v1355_v43, %v1354_v41 }
 0x45d   :  { %v885_v34 = vpop.f32.mrf.mxu0 }
 0x45e   :  { %v917_v51 = vpack.c.bf16 %v885_v34, %v882_v42 }
 0x45f   :  { %v1358_v44 = vpop.f32.mrf.mxu0 }
 0x461   :  { %v898_v45 = vpop.f32.mrf.mxu0 }
 0x463   :  { %v1359_v46 = vpop.f32.mrf.mxu0 }
 0x464   :  { %v920_v47 = vpack.c.bf16 %v1359_v46, %v1358_v44 }
 0x465   :  { %v901_v48 = vpop.f32.mrf.mxu0 }
 0x466   :  { %v919_v49 = vpack.c.bf16 %v901_v48, %v898_v45  ;;  %1360 = vmatprep.subr.bf16.mxu1 %v920_v47 }
 0x467   :  { %1361 = vmatpush3.bf16.msra.mxu1 %v920_v47 }
 0x468   :  { %1362 = vmatprep.subr.bf16.mxu1 %v919_v49 }
 0x46b   :  { %1363 = vmatpush3.bf16.msra.mxu1 %v919_v49 }
 0x46c   :  { %1364 = vmatprep.subr.bf16.mxu1 %v918_v50 }
 0x46f   :  { %1365 = vmatpush3.bf16.msra.mxu1 %v918_v50 }
 0x470   :  { %1366 = vmatprep.subr.bf16.mxu1 %v917_v51 }
 0x473   :  { %1367 = vmatpush3.bf16.msra.mxu1 %v917_v51 }
 0x474   :  { %1368 = vmatprep.subr.bf16.mxu1 %v916_v52 }
 0x477   :  { %1369 = vmatpush3.bf16.msra.mxu1 %v916_v52 }
 0x478   :  { %1370 = vmatprep.subr.bf16.mxu1 %v915_v53 }
 0x47b   :  { %1371 = vmatpush3.bf16.msra.mxu1 %v915_v53 }
 0x47c   :  { %1372 = vmatprep.subr.bf16.mxu1 %v914_v54 }
 0x47f   :  { %1373 = vmatpush3.bf16.msra.mxu1 %v914_v54 }
 0x480   :  { %1374 = vmatprep.subr.bf16.mxu1 %v913_v55 }
 0x483   :  { %1375 = vmatpush3.bf16.msra.mxu1 %v913_v55 }
 0x486   :  { %1377 = vmatmul.mubr.bf16.vlgmr.msra.gmra.mxu1 %v1525_v14 }
 0x487   :  { %1380 = vmatprep.mubr.bf16.mxu1 %v1530_v15 }
 0x48e   :  { %1381 = vmatmul.mubr.bf16.gmra.mxu1 %v1540_v17 }
 0x48f   :  { %1384 = vmatprep.mubr.bf16.mxu1 %v1545_v18 }
 0x496   :  { %1385 = vmatmul.mubr.bf16.gmra.mxu1 %v1552_v19 }
 0x497   :  { %1388 = vmatprep.mubr.bf16.mxu1 %v1557_v20 }
 0x49e   :  { %1389 = vmatmul.mubr.bf16.gmra.mxu1 %v1564_v21 }
 0x546   :  { %v1378_v57 = vpop.f32.mrf.mxu1 }
 0x547   :  { %v971_v59 = vadd.f32 %v1378_v57, %v1103_v56 }
 0x548   :  { %v962_v58 = vpop.f32.mrf.mxu1 }
 0x549   :  { %v1027_v14 = vmax.f32 %v971_v59, 0.0  ;;  %v963_v60 = vadd.f32 %v1103_v56, %v962_v58 }
 0x54a   :  { %v1379_v15 = vpop.f32.mrf.mxu1 }
 0x54b   :  { %1043 = vst [vmem:[%s1702_s8 + $0x10] sm:$0xff] %v1027_v14  ;;  %v1025_v17 = vmax.f32 %v963_v60, 0.0  ;;  %v974_v18 = vadd.f32 %v1379_v15, %v1103_v56 }
 0x54c   :  { %v965_v19 = vpop.f32.mrf.mxu1 }
 0x54d   :  { %1041 = vst [vmem:[%s1702_s8] sm:$0xff] %v1025_v17  ;;  %v1028_v20 = vmax.f32 %v974_v18, 0.0  ;;  %v966_v21 = vadd.f32 %v1103_v56, %v965_v19 }
 0x54e   :  { %v1382_v61 = vpop.f32.mrf.mxu1 }
 0x54f   :  { %1044 = vst [vmem:[%s1702_s8 + $0x18] sm:$0xff] %v1028_v20  ;;  %v1026_v62 = vmax.f32 %v966_v21, 0.0  ;;  %v987_v63 = vadd.f32 %v1382_v61, %v1103_v56 }
 0x550   :  { %v978_v0 = vpop.f32.mrf.mxu1 }
 0x551   :  { %1042 = vst [vmem:[%s1702_s8 + $0x8] sm:$0xff] %v1026_v62  ;;  %v1031_v1 = vmax.f32 %v987_v63, 0.0  ;;  %v979_v2 = vadd.f32 %v1103_v56, %v978_v0 }
 0x552   :  { %v1383_v3 = vpop.f32.mrf.mxu1 }
 0x553   :  { %1047 = vst [vmem:[%s1702_s8 + $0x30] sm:$0xff] %v1031_v1  ;;  %v1029_v5 = vmax.f32 %v979_v2, 0.0  ;;  %v990_v6 = vadd.f32 %v1383_v3, %v1103_v56 }
 0x554   :  { %v981_v7 = vpop.f32.mrf.mxu1 }
 0x555   :  { %1045 = vst [vmem:[%s1702_s8 + $0x20] sm:$0xff] %v1029_v5  ;;  %v1032_v8 = vmax.f32 %v990_v6, 0.0  ;;  %v982_v9 = vadd.f32 %v1103_v56, %v981_v7 }
 0x556   :  { %v1386_v10 = vpop.f32.mrf.mxu1 }
 0x557   :  { %1048 = vst [vmem:[%s1702_s8 + $0x38] sm:$0xff] %v1032_v8  ;;  %v1030_v11 = vmax.f32 %v982_v9, 0.0  ;;  %v1003_v12 = vadd.f32 %v1386_v10, %v1103_v56 }
 0x558   :  { %v994_v13 = vpop.f32.mrf.mxu1 }
 0x559   :  { %1046 = vst [vmem:[%s1702_s8 + $0x28] sm:$0xff] %v1030_v11  ;;  %v1035_v16 = vmax.f32 %v1003_v12, 0.0  ;;  %v995_v22 = vadd.f32 %v1103_v56, %v994_v13 }
 0x55a   :  { %v1387_v23 = vpop.f32.mrf.mxu1 }
 0x55b   :  { %1051 = vst [vmem:[%s1702_s8 + $0x50] sm:$0xff] %v1035_v16  ;;  %v1033_v24 = vmax.f32 %v995_v22, 0.0  ;;  %v1006_v25 = vadd.f32 %v1387_v23, %v1103_v56 }
 0x55c   :  { %v997_v26 = vpop.f32.mrf.mxu1 }
 0x55d   :  { %1049 = vst [vmem:[%s1702_s8 + $0x40] sm:$0xff] %v1033_v24  ;;  %v1036_v27 = vmax.f32 %v1006_v25, 0.0  ;;  %v998_v28 = vadd.f32 %v1103_v56, %v997_v26 }
 0x55e   :  { %v1390_v29 = vpop.f32.mrf.mxu1 }
 0x55f   :  { %1052 = vst [vmem:[%s1702_s8 + $0x58] sm:$0xff] %v1036_v27  ;;  %v1034_v30 = vmax.f32 %v998_v28, 0.0  ;;  %v1019_v31 = vadd.f32 %v1390_v29, %v1103_v56 }
 0x560   :  { %v1010_v32 = vpop.f32.mrf.mxu1 }
 0x561   :  { %1050 = vst [vmem:[%s1702_s8 + $0x48] sm:$0xff] %v1034_v30  ;;  %v1039_v33 = vmax.f32 %v1019_v31, 0.0  ;;  %v1011_v4 = vadd.f32 %v1103_v56, %v1010_v32 }
 0x562   :  { %v1391_v35 = vpop.f32.mrf.mxu1 }
 0x563   :  { %1055 = vst [vmem:[%s1702_s8 + $0x70] sm:$0xff] %v1039_v33  ;;  %v1037_v36 = vmax.f32 %v1011_v4, 0.0  ;;  %v1022_v37 = vadd.f32 %v1391_v35, %v1103_v56 }
 0x564   :  { %v1013_v38 = vpop.f32.mrf.mxu1 }
 0x565   :  { %1053 = vst [vmem:[%s1702_s8 + $0x60] sm:$0xff] %v1037_v36  ;;  %v1040_v39 = vmax.f32 %v1022_v37, 0.0  ;;  %v1014_v40 = vadd.f32 %v1103_v56, %v1013_v38 }
 0x567   :  { %1056 = vst [vmem:[%s1702_s8 + $0x78] sm:$0xff] %v1040_v39  ;;  %v1038_v41 = vmax.f32 %v1014_v40, 0.0 }
 0x569   :  { %1054 = vst [vmem:[%s1702_s8 + $0x68] sm:$0xff] %v1038_v41 }

</bundles_post_ra>
